<compile_context>
chip_gen: v7x
topology: tpu7x:2x2x1
jax: 0.10.0
libtpu: 0.0.40
codegen_flags: <defaults>
</compile_context>

<pallas_src>
import functools

import jax
import jax.numpy as jnp
from jax.experimental import pallas as pl
from jax.experimental.pallas import tpu as pltpu

_EPS = 1e-6  # matches torch.nn.functional.pairwise_distance default eps


def _conloss_kernel(pos_ref, neg_ref, out_ref, *, batch, tile_b):
    c = pl.program_id(0)            # core / partial-sum index ("parallel")
    i = pl.program_id(1)            # batch-tile step ("arbitrary", reduction)
    steps = pl.num_programs(1)

    # Zero this core's resident partial-sum block at the first reduction step.
    @pl.when(i == 0)
    def _():
        out_ref[...] = jnp.zeros_like(out_ref)

    pos = pos_ref[...].astype(jnp.float32)
    neg = neg_ref[...].astype(jnp.float32)

    # pairwise_distance squared: sum((neg - pos + eps)^2) along the lane dim.
    diff = neg - pos + _EPS
    sq_dist = jnp.sum(diff * diff, axis=-1, keepdims=True)       # (TB, 1)

    # Mask rows past the true batch (padded last tile / clamped duplicate tiles).
    tile_idx = c * steps + i
    row_start = tile_idx * tile_b
    row_ids = jax.lax.broadcasted_iota(jnp.int32, (tile_b, 1), 0) + row_start
    valid = row_ids < batch

    safe_dist = jnp.where(valid, sq_dist, 1.0)                    # avoid 1/garbage
    val = jnp.where(valid, jnp.exp(1.0 / safe_dist), 0.0)         # (TB, 1)

    partial = jnp.sum(val, keepdims=True)                         # (1, 1)
    out_ref[...] += jnp.broadcast_to(partial.reshape(1, 1, 1), out_ref.shape)


def con_loss(positive: jax.Array, negative: jax.Array, *, tile_b=None,
             num_cores: int = 2) -> jax.Array:
    """Pallas implementation of ConLoss.forward. Returns a scalar f32 loss."""
    assert positive.shape == negative.shape and positive.ndim == 2
    assert positive.dtype == negative.dtype
    B, D = positive.shape
    itemsize = jnp.dtype(positive.dtype).itemsize
    row_align = max(8, 32 // itemsize)      # 8 for f32, 16 for bf16, 32 for 8-bit

    if tile_b is None:
        # 2 inputs x 2 pipeline buffers x tile_b x D bytes must stay well under
        # the scoped-VMEM default on every generation (16 MiB on v5e).
        budget_bytes = 10 * 1024 * 1024
        per_row_bytes = 2 * 2 * D * itemsize
        tile_b = max(row_align, min(2048, budget_bytes // per_row_bytes))
    if tile_b >= B:
        tile_b = B                                  # single full-dim tile
    else:
        tile_b = max(row_align, (tile_b // row_align) * row_align)

    num_tiles = pl.cdiv(B, tile_b)
    nc = num_cores if num_tiles >= 2 else 1         # only split when there is work
    steps = pl.cdiv(num_tiles, nc)

    def in_map(c, i):
        # Clamp duplicate trailing tiles into range; their rows are masked in-kernel.
        return (jnp.minimum(c * steps + i, num_tiles - 1), 0)

    kernel = functools.partial(_conloss_kernel, batch=B, tile_b=tile_b)

    out = pl.pallas_call(
        kernel,
        out_shape=jax.ShapeDtypeStruct((nc, 8, 128), jnp.float32),
        grid_spec=pltpu.PrefetchScalarGridSpec(
            num_scalar_prefetch=0,
            grid=(nc, steps),
            in_specs=[
                pl.BlockSpec((tile_b, D), in_map),
                pl.BlockSpec((tile_b, D), in_map),
            ],
            out_specs=pl.BlockSpec((1, 8, 128), lambda c, i: (c, 0, 0)),
        ),
        compiler_params=pltpu.CompilerParams(
            dimension_semantics=("parallel", "arbitrary"),
        ),
    )(positive, negative)

    # Each core's partial sum is replicated across its (8, 128) block.
    return jnp.sum(out[:, 0, 0]) / B


def con_loss_ref(positive, negative):
    """Pure-JAX reference mirroring the PyTorch forward."""
    diff = negative.astype(jnp.float32) - positive.astype(jnp.float32) + _EPS
    sq_dist = jnp.sum(diff * diff, axis=-1)
    return jnp.mean(jnp.exp(1.0 / sq_dist))


if __name__ == "__main__":
    key = jax.random.PRNGKey(0)
    kp, kn = jax.random.split(key)

    # Case 1: small batch, single-tile path (TB == B).
    B, D = 8, 128
    positive = jax.random.normal(kp, (B, D), dtype=jnp.float32)
    negative = jax.random.normal(kn, (B, D), dtype=jnp.float32)
    loss = jax.block_until_ready(con_loss(positive, negative))
    ref = jax.block_until_ready(con_loss_ref(positive, negative))
    assert jnp.allclose(loss, ref, rtol=1e-5, atol=1e-5), (loss, ref)

    # Case 2: force the tiled / masked / two-partial-sum path
    # (B=40 rows, TB=16 -> 3 tiles, partial last tile, 2 partial sums).
    B2, D2 = 40, 128
    kp2, kn2 = jax.random.split(jax.random.PRNGKey(1))
    positive2 = jax.random.normal(kp2, (B2, D2), dtype=jnp.float32)
    negative2 = jax.random.normal(kn2, (B2, D2), dtype=jnp.float32)
    loss2 = jax.block_until_ready(con_loss(positive2, negative2, tile_b=16))
    ref2 = jax.block_until_ready(con_loss_ref(positive2, negative2))
    assert jnp.allclose(loss2, ref2, rtol=1e-5, atol=1e-5), (loss2, ref2)

    print("KERNEL_OK")
</pallas_src>

<mosaic_0001>
module attributes {stable_mosaic.version = 11 : i64} {
  func.func @_conloss_kernel(%arg0: i32, %arg1: i32, %arg2: memref<8x128xf32, #tpu.memory_space<vmem>>, %arg3: memref<8x128xf32, #tpu.memory_space<vmem>>, %arg4: memref<1x8x128xf32, #tpu.memory_space<vmem>>) attributes {dimension_semantics = [#tpu.dimension_semantics<parallel>, #tpu.dimension_semantics<arbitrary>], iteration_bounds = array<i64: 1, 1>, scalar_prefetch = 0 : i64, scratch_operands = 0 : i64, tpu.core_type = #tpu.core_type<tc>, window_params = [{transform_indices = @transform_0, window_bounds = array<i64: 8, 128>}, {transform_indices = @transform_1, window_bounds = array<i64: 8, 128>}, {transform_indices = @transform_2, window_bounds = array<i64: 1, 8, 128>}]} {
    %c0_i32 = arith.constant 0 : i32
    %0 = arith.cmpi eq, %arg1, %c0_i32 : i32
    %1 = arith.extui %0 : i1 to i32
    %c0_i32_0 = arith.constant 0 : i32
    %2 = arith.cmpi ne, %1, %c0_i32_0 : i32
    scf.if %2 {
      %cst_16 = arith.constant 0.000000e+00 : f32
      %37 = vector.broadcast %cst_16 : f32 to vector<1x8x128xf32>
      %c0_17 = arith.constant 0 : index
      %c0_18 = arith.constant 0 : index
      %c0_19 = arith.constant 0 : index
      %38 = vector.load %arg4[%c0_17, %c0_18, %c0_19] : memref<1x8x128xf32, #tpu.memory_space<vmem>>, vector<1x8x128xf32>
      tpu.vector_store %arg4[%c0_17, %c0_18, %c0_19], %37 {strides = array<i32>} : memref<1x8x128xf32, #tpu.memory_space<vmem>>, vector<1x8x128xf32>,
    } else {
    }
    %c0 = arith.constant 0 : index
    %c0_1 = arith.constant 0 : index
    %3 = vector.load %arg2[%c0, %c0_1] : memref<8x128xf32, #tpu.memory_space<vmem>>, vector<8x128xf32>
    %c0_2 = arith.constant 0 : index
    %c0_3 = arith.constant 0 : index
    %4 = vector.load %arg3[%c0_2, %c0_3] : memref<8x128xf32, #tpu.memory_space<vmem>>, vector<8x128xf32>
    %5 = arith.subf %4, %3 : vector<8x128xf32>
    %cst = arith.constant 9.99999997E-7 : f32
    %6 = vector.broadcast %cst : f32 to vector<8x128xf32>
    %7 = arith.addf %5, %6 : vector<8x128xf32>
    %8 = arith.mulf %7, %7 : vector<8x128xf32>
    %cst_4 = arith.constant dense<0.000000e+00> : vector<8xf32>
    %9 = vector.multi_reduction <add>, %8, %cst_4 [1] : vector<8x128xf32> to vector<8xf32>
    %10 = vector.shape_cast %9 : vector<8xf32> to vector<8x1xf32>
    %c1_i32 = arith.constant 1 : i32
    %11 = arith.muli %arg0, %c1_i32 : i32
    %12 = arith.addi %11, %arg1 : i32
    %c8_i32 = arith.constant 8 : i32
    %13 = arith.muli %12, %c8_i32 : i32
    %14 = tpu.iota {dimensions = array<i32: 0>} : vector<8x1xi32>
    %15 = vector.broadcast %13 : i32 to vector<8x1xi32>
    %16 = arith.addi %14, %15 : vector<8x1xi32>
    %c8_i32_5 = arith.constant 8 : i32
    %17 = vector.broadcast %c8_i32_5 : i32 to vector<8x1xi32>
    %18 = arith.cmpi slt, %16, %17 : vector<8x1xi32>
    %cst_6 = arith.constant 1.000000e+00 : f32
    %19 = vector.broadcast %cst_6 : f32 to vector<8x1xf32>
    %20 = arith.select %18, %10, %19 : vector<8x1xi1>, vector<8x1xf32>
    %cst_7 = arith.constant 1.000000e+00 : f32
    %21 = vector.broadcast %cst_7 : f32 to vector<8x1xf32>
    %22 = arith.divf %21, %20 : vector<8x1xf32>
    %23 = math.exp %22 : vector<8x1xf32>
    %cst_8 = arith.constant 0.000000e+00 : f32
    %24 = vector.broadcast %cst_8 : f32 to vector<8x1xf32>
    %25 = arith.select %18, %23, %24 : vector<8x1xi1>, vector<8x1xf32>
    %26 = vector.shape_cast %25 : vector<8x1xf32> to vector<1x8x1xf32>
    %cst_9 = arith.constant dense<0.000000e+00> : vector<1xf32>
    %27 = vector.multi_reduction <add>, %26, %cst_9 [1, 2] : vector<1x8x1xf32> to vector<1xf32>
    %28 = vector.shape_cast %27 : vector<1xf32> to vector<1x1x1xf32>
    %29 = vector.extract %28[0, 0, 0] : f32 from vector<1x1x1xf32>
    %30 = vector.broadcast %29 : f32 to vector<1x1xf32>
    %c0_10 = arith.constant 0 : index
    %c0_11 = arith.constant 0 : index
    %c0_12 = arith.constant 0 : index
    %31 = vector.load %arg4[%c0_10, %c0_11, %c0_12] : memref<1x8x128xf32, #tpu.memory_space<vmem>>, vector<1x8x128xf32>
    %32 = vector.shape_cast %30 : vector<1x1xf32> to vector<1x1x1xf32>
    %33 = vector.shape_cast %32 : vector<1x1x1xf32> to vector<1x1x1xf32>
    %34 = vector.broadcast %33 : vector<1x1x1xf32> to vector<1x8x128xf32>
    %35 = arith.addf %31, %34 : vector<1x8x128xf32>
    %c0_13 = arith.constant 0 : index
    %c0_14 = arith.constant 0 : index
    %c0_15 = arith.constant 0 : index
    %36 = vector.load %arg4[%c0_13, %c0_14, %c0_15] : memref<1x8x128xf32, #tpu.memory_space<vmem>>, vector<1x8x128xf32>
    tpu.vector_store %arg4[%c0_13, %c0_14, %c0_15], %35 {strides = array<i32>} : memref<1x8x128xf32, #tpu.memory_space<vmem>>, vector<1x8x128xf32>,
    return
  }
  func.func @transform_0(%arg0: i32, %arg1: i32) -> (i32, i32) {
    %c1_i32 = arith.constant 1 : i32
    %0 = arith.muli %arg0, %c1_i32 : i32
    %1 = arith.addi %0, %arg1 : i32
    %c0_i32 = arith.constant 0 : i32
    %2 = arith.minsi %1, %c0_i32 : i32
    %c0_i32_0 = arith.constant 0 : i32
    %c0_i32_1 = arith.constant 0 : i32
    return %2, %c0_i32_0 : i32, i32
  }
  func.func @transform_1(%arg0: i32, %arg1: i32) -> (i32, i32) {
    %c1_i32 = arith.constant 1 : i32
    %0 = arith.muli %arg0, %c1_i32 : i32
    %1 = arith.addi %0, %arg1 : i32
    %c0_i32 = arith.constant 0 : i32
    %2 = arith.minsi %1, %c0_i32 : i32
    %c0_i32_0 = arith.constant 0 : i32
    %c0_i32_1 = arith.constant 0 : i32
    return %2, %c0_i32_0 : i32, i32
  }
  func.func @transform_2(%arg0: i32, %arg1: i32) -> (i32, i32, i32) {
    %c0_i32 = arith.constant 0 : i32
    %c0_i32_0 = arith.constant 0 : i32
    %c0_i32_1 = arith.constant 0 : i32
    return %arg0, %c0_i32, %c0_i32_0 : i32, i32, i32
  }
}

</mosaic_0001>

<bundles_post_ra>
// kernel: tpu_custom_call.1
= control target key start
LH: loop header
LB: loop body
LE: loop exit
PB: predicated region body
PF: predicated region fallthrough
CT: control target
= control target key end

     0   :  { %7 = vsyncpa [#allocation3], 0  ;;  %s248_s0 = inlined_call_operand.hbm [shape: f32[8,128], index: 0, kind: input, shape index: {}]   ;;  %s249_s1 = inlined_call_operand.hbm [shape: f32[8,128], index: 1, kind: input, shape index: {}]   ;;  %s250_s2 = inlined_call_operand.hbm [shape: f32[1,8,128], index: 2, kind: output, shape index: {}]  }
   0x1   :  { %8 = vsyncpa [#allocation6], 0 }
   0x2   :  { %9 = vsyncpa [#allocation4], 0  ;;  %s194_s9 = smov [#allocation2]   ;;  %s195_s11 = smov [#allocation5]  }
   0x3   :  { %s21_s10 = sshll.u32 %s194_s9, 4  ;;  %s36_s12 = sshll.u32 %s195_s11, 4  ;;  %s22_s10 = int_to_ptr.vmem [resolvable:$true] %s21_s10  ;;  %s37_s12 = int_to_ptr.vmem [resolvable:$true] %s36_s12 }
   0x4   :  { %s122_s15 = scalar_lea.hbm %s248_s0, 128 }
   0x5   :  { %p123_p0 = scmp.ne.s32.totalorder %s248_s0, %s122_s15  ;;  %p126_p1 = scmp.lt.u32.totalorder %s122_s15, %s248_s0 }
   0x7   :  { %p128_p2 = pnand %p126_p1, %p123_p0 }
   0x9   :  { %131 = shalt.err (!%p128_p2)
}
   0xa   :  { %s132_s20 = scalar_lea.vmem %s22_s10, 128  ;;  %p137_p4 = scmp.lt.s32.totalorder %s22_s10, %s22_s10 }
   0xb   :  { %p133_p3 = scmp.ne.s32.totalorder %s22_s10, %s132_s20  ;;  %p138_p5 = scmp.lt.s32.totalorder %s132_s20, %s132_s20 }
   0xd   :  { %p139_p6 = por %p138_p5, %p137_p4 }
   0xf   :  { %p140_p7 = pnand %p139_p6, %p133_p3 }
  0x11   :  { %143 = shalt.err (!%p140_p7)
}
  0x12   :  { %24 = dma.hbm_to_vmem [thread:$0]  %s248_s0, 128, %s22_s10, [#allocation3]  }
  0x13   :  { %s144_s25 = scalar_lea.hbm %s249_s1, 128 }
  0x14   :  { %p145_p8 = scmp.ne.s32.totalorder %s249_s1, %s144_s25  ;;  %p148_p9 = scmp.lt.u32.totalorder %s144_s25, %s249_s1 }
  0x16   :  { %p150_p10 = pnand %p148_p9, %p145_p8 }
  0x18   :  { %153 = shalt.err (!%p150_p10)
}
  0x19   :  { %s154_s30 = scalar_lea.vmem %s37_s12, 128  ;;  %p159_p12 = scmp.lt.s32.totalorder %s37_s12, %s37_s12 }
  0x1a   :  { %p155_p11 = scmp.ne.s32.totalorder %s37_s12, %s154_s30  ;;  %p160_p13 = scmp.lt.s32.totalorder %s154_s30, %s154_s30 }
  0x1c   :  { %p161_p0 = por %p160_p13, %p159_p12 }
  0x1e   :  { %p162_p1 = pnand %p161_p0, %p155_p11 }
  0x20   :  { %165 = shalt.err (!%p162_p1)
}
  0x21   :  { %39 = dma.hbm_to_vmem [thread:$0]  %s249_s1, 128, %s37_s12, [#allocation6]  }
  0x22   :  { %188 = dma.done.wait [#allocation3], 128  }
  0x23   :  { %189 = vsyncadd [#allocation3], 4294967168 }
  0x24   :  { %190 = dma.done.wait [#allocation6], 128  }
  0x25   :  { %191 = vsyncadd [#allocation6], 4294967168  ;;  %v57_v0 = vld [vmem:[#allocation2] sm:$0xff]  ;;  %v58_v1 = vld [vmem:[#allocation5] sm:$0xff]  ;;  %vm77_vm0 = vcmask 7168   ;;  %s196_s1 = smov [#allocation7]  }
  0x26   :  { %v59_v2 = vsub.f32 %v58_v1, %v57_v0  ;;  %s98_s4 = sshll.u32 %s196_s1, 4  ;;  %s99_s4 = int_to_ptr.vmem [resolvable:$true] %s98_s4 }
  0x27   :  { %s166_s6 = scalar_lea.vmem %s99_s4, 128  ;;  %p171_p3 = scmp.lt.s32.totalorder %s99_s4, %s99_s4 }
  0x28   :  { %v60_v3 = vadd.f32 1e-06, %v59_v2  ;;  %p167_p2 = scmp.ne.s32.totalorder %s99_s4, %s166_s6  ;;  %p172_p4 = scmp.lt.s32.totalorder %s166_s6, %s166_s6 }
  0x2a   :  { %v61_v4 = vmul.f32 %v60_v3, %v60_v3  ;;  %p173_p5 = por %p172_p4, %p171_p3 }
  0x2c   :  { %62 = vadd.xlane.f32.xlu0 %v61_v4  ;;  %p174_p6 = pnand %p173_p5, %p167_p2 }
  0xb9   :  { %v63_v5 = vpop.xlane.xlu0 %62 }
  0xba   :  { %118 = vrcp.f32 %v63_v5 }
  0xc4   :  { %v119_v6 = vpop.eup %118 }
  0xc5   :  { %v74_v7 = vmul.f32 1.442695, %v119_v6 }
  0xc7   :  { %120 = vpow2.f32 %v74_v7 }
  0xd1   :  { %v121_v8 = vpop.eup %120 }
  0xd2   :  { %v78_v9 = vsel %vm77_vm0, %v121_v8, 0.0 }
  0xd3   :  { %79 = vadd.xlane.f32.xlu0 %v78_v9 }
 0x160   :  { %v80_v10 = vpop.xlane.xlu0 %79 }
 0x161   :  { %v81_v11 = vrot.slane %v80_v10, 4 }
 0x163   :  { %v82_v12 = vadd.f32 %v81_v11, %v80_v10 }
 0x165   :  { %v83_v13 = vrot.slane %v82_v12, 2 }
 0x167   :  { %v84_v14 = vadd.f32 %v83_v13, %v82_v12 }
 0x169   :  { %v85_v15 = vrot.slane %v84_v14, 1 }
 0x16b   :  { %v86_v16 = vadd.f32 %v85_v15, %v84_v14 }
 0x16d   :  { %112 = vpush %v86_v16 }
 0x19e   :  { %s113_s5 = spop %112 }
 0x19f   :  { %v89_v17 = vstv %s113_s5 }
 0x1a0   :  { %91 = vst [vmem:[#allocation7] sm:$0xff] %v89_v17 }
 0x1a1   :  { %177 = shalt.err (!%p174_p6)
}
 0x1a2   :  { %s178_s9 = scalar_lea.hbm %s250_s2, 128 }
 0x1a3   :  { %p179_p7 = scmp.ne.s32.totalorder %s250_s2, %s178_s9  ;;  %p182_p8 = scmp.lt.u32.totalorder %s178_s9, %s250_s2 }
 0x1a5   :  { %p184_p9 = pnand %p182_p8, %p179_p7 }
 0x1a7   :  { %187 = shalt.err (!%p184_p9)
}
 0x1a8   :  { %101 = dma.vmem_to_hbm [thread:$0]  %s99_s4, 128, %s250_s2, [#allocation4]  }
 0x1a9   :  { %192 = dma.done.wait [#allocation4], 128  }
 0x1aa   :  { %193 = vsyncadd [#allocation4], 4294967168 }
 0x1ab   :  { %105 = vsyncpa [#allocation3], 1 }
 0x1ac   :  { %106 = vsyncpa [#allocation6], 1 }
 0x1ad   :  { %107 = vsyncpa [#allocation4], 1 }

</bundles_post_ra>
